<compile_context>
chip_gen: v5e
topology: v5e:2x2
jax: 0.10.0
libtpu: 0.0.40
codegen_flags: <defaults>
</compile_context>

<pallas_src>
import functools

import jax
import jax.numpy as jnp
from jax.experimental import pallas as pl
from jax.experimental.pallas import tpu as pltpu


def _round_up(x, m):
    return (x + m - 1) // m * m


# ---------------------------------------------------------------------------
# Kernel
# ---------------------------------------------------------------------------

def _make_half_masks(half):
    """0/1 lane masks selecting lanes [0:half) and [half:2*half)."""
    n = 2 * half
    lane = jax.lax.broadcasted_iota(jnp.int32, (1, n), 1)
    m1 = (lane < half).astype(jnp.float32)
    return m1, 1.0 - m1


def _half_layernorm(x, gamma, beta, half, masks, eps=1e-5):
    """LayerNorm applied independently to lanes [0:half) and [half:2*half)."""
    m1, m2 = masks
    inv_h = 1.0 / half
    # Both reductions read the same input -> they can overlap in the XLU.
    mu1 = jnp.sum(x * m1, axis=-1, keepdims=True) * inv_h
    mu2 = jnp.sum(x * m2, axis=-1, keepdims=True) * inv_h
    x2 = x * x
    ex2_1 = jnp.sum(x2 * m1, axis=-1, keepdims=True) * inv_h
    ex2_2 = jnp.sum(x2 * m2, axis=-1, keepdims=True) * inv_h
    mu = m1 * mu1 + m2 * mu2
    var = (m1 * ex2_1 + m2 * ex2_2) - mu * mu
    inv = jax.lax.rsqrt(var + eps)
    return (x - mu) * inv * gamma + beta


def _critic_kernel(dims, layer_norm,
                   state_ref, action_ref, w_ref, v_ref, q_ref):
    state_dim, n_actions, f1, f2 = dims
    n1 = 2 * f1
    n2 = 2 * f2
    rs = _round_up(state_dim, 8)
    ra = _round_up(n_actions, 8)
    r1 = _round_up(n1, 8)
    off_a = rs
    off_2 = rs + ra
    off_f = rs + ra + r1

    # Static, sublane-aligned windows into the packed weight blob (views).
    ws = w_ref[0:state_dim, 0:n1]                  # first layer, state rows
    wa = w_ref[off_a:off_a + n_actions, 0:n1]      # first layer, action rows
    w2 = w_ref[off_2:off_2 + n1, 0:n2]             # blockdiag(W2, W4)
    wf = w_ref[off_f:off_f + n2, 0:2]              # blockdiag(Wf1, Wf2)

    b1 = v_ref[0:1, 0:n1]
    g1 = v_ref[1:2, 0:n1]
    be1 = v_ref[2:3, 0:n1]
    b2 = v_ref[3:4, 0:n2]
    g2 = v_ref[4:5, 0:n2]
    be2 = v_ref[5:6, 0:n2]
    bf = v_ref[6:7, 0:2]

    # Hoisted LN lane masks (identical object reused when F1 == F2).
    if layer_norm:
        masks1 = _make_half_masks(f1)
        masks2 = masks1 if f2 == f1 else _make_half_masks(f2)

    # Fused first layer of both branches (no concat of state/action needed).
    # bf16 inputs are dtype-promoted to f32 before the MXU -> f32 accumulation.
    h = (jnp.dot(state_ref[...], ws, preferred_element_type=jnp.float32)
         + jnp.dot(action_ref[...], wa, preferred_element_type=jnp.float32)
         + b1)
    if layer_norm:
        h = _half_layernorm(h, g1, be1, f1, masks1)
    h = jnp.maximum(h, 0.0)

    # Fused second layer (block-diagonal keeps branches independent).
    h = jnp.dot(h, w2, preferred_element_type=jnp.float32) + b2
    if layer_norm:
        h = _half_layernorm(h, g2, be2, f2, masks2)
    h = jnp.maximum(h, 0.0)

    # Single lane-dense (B, 2) output: lane 0 = Q1, lane 1 = Q2.
    q_ref[...] = jnp.dot(h, wf, preferred_element_type=jnp.float32) + bf


# ---------------------------------------------------------------------------
# Wrapper
# ---------------------------------------------------------------------------

def _grid_block(batch, batch_block, min_grid_batch):
    """Per-step batch tile, or None for the grid-less single invocation."""
    if batch < min_grid_batch:
        return None
    # >= 2 grid steps (so v7x's two TensorCores can split the work), capped at
    # batch_block, rows kept sublane-aligned (multiple of 8).
    block = min(batch_block, _round_up(pl.cdiv(batch, 2), 8))
    return max(block, 8)


def critic_forward(state, action, wblob, vblob, dims, layer_norm=True,
                   batch_block=512, min_grid_batch=256):
    """Critic forward pass as a single Pallas TPU kernel.

    dims = (state_dim, n_actions, full1_dim, full2_dim)
    Returns the packed Q array of shape (batch, 2): lane 0 = Q1, lane 1 = Q2.
    Use split_q() to get the torch-style (Q1, Q2) pair.
    """
    batch = state.shape[0]
    kernel = functools.partial(_critic_kernel, dims, layer_norm)
    out_shape = jax.ShapeDtypeStruct((batch, 2), jnp.float32)
    block = _grid_block(batch, batch_block, min_grid_batch)

    if block is None:
        # Small batch: single grid-less invocation, everything resident.
        f1, f2 = dims[2], dims[3]
        resident = (state.size * state.dtype.itemsize
                    + action.size * action.dtype.itemsize
                    + wblob.size * wblob.dtype.itemsize
                    + vblob.size * vblob.dtype.itemsize
                    + batch * 2 * 4                      # output
                    + batch * 2 * f1 * 4                 # layer-1 activations
                    + batch * 2 * f2 * 4)                # layer-2 activations
        # Generous margin; sized explicitly so v5e's 16 MiB scoped default is
        # never a surprise ceiling.
        vmem_limit = int(min(100 << 20, max(8 << 20, 4 * resident + (4 << 20))))
        vmem = pl.BlockSpec(memory_space=pltpu.MemorySpace.VMEM)
        q = pl.pallas_call(
            kernel,
            out_shape=out_shape,
            in_specs=[vmem, vmem, vmem, vmem],
            out_specs=vmem,
            compiler_params=pltpu.CompilerParams(vmem_limit_bytes=vmem_limit),
        )(state, action, wblob, vblob)
    else:
        # Pipelined, batch-parallel grid. pl.cdiv handles batches that are not
        # a multiple of the block: rows are independent, so the ragged last
        # block's out-of-bounds rows compute garbage that is clipped on
        # writeback.
        grid = (pl.cdiv(batch, block),)
        q = pl.pallas_call(
            kernel,
            out_shape=out_shape,
            grid=grid,
            in_specs=[
                pl.BlockSpec((block, state.shape[1]), lambda i: (i, 0)),
                pl.BlockSpec((block, action.shape[1]), lambda i: (i, 0)),
                # Constant index_map -> weight/vector blobs stay resident.
                pl.BlockSpec(wblob.shape, lambda i: (0, 0)),
                pl.BlockSpec(vblob.shape, lambda i: (0, 0)),
            ],
            out_specs=pl.BlockSpec((block, 2), lambda i: (i, 0)),
            compiler_params=pltpu.CompilerParams(
                dimension_semantics=("parallel",)),
        )(state, action, wblob, vblob)

    return q


def split_q(q):
    """Torch-style (Q1, Q2), each (batch, 1). Costs two small strided copies."""
    return q[:, 0:1], q[:, 1:2]


# ---------------------------------------------------------------------------
# Parameter construction / packing (done once, outside the hot loop)
# ---------------------------------------------------------------------------

def _kaiming_uniform(key, fan_in, fan_out):
    # kaiming_uniform_(a=0.01, mode='fan_in', nonlinearity='relu'):
    # for nonlinearity='relu' the gain is sqrt(2) (the `a` arg is ignored),
    # so bound = sqrt(2) * sqrt(3 / fan_in) = sqrt(6 / fan_in).
    bound = jnp.sqrt(6.0 / fan_in)
    # stored transposed: [fan_in, fan_out]
    return jax.random.uniform(key, (fan_in, fan_out), jnp.float32, -bound, bound)


def _linear_default(key, fan_in, fan_out):
    bound = 1.0 / jnp.sqrt(fan_in)
    return jax.random.uniform(key, (fan_in, fan_out), jnp.float32, -bound, bound)


def _bias(key, fan_in, fan_out):
    bound = 1.0 / jnp.sqrt(fan_in)
    return jax.random.uniform(key, (1, fan_out), jnp.float32, -bound, bound)


def make_params(key, state_dim, n_actions, full1_dim, full2_dim):
    d_in = state_dim + n_actions
    keys = jax.random.split(key, 12)
    ones1 = jnp.ones((1, full1_dim), jnp.float32)
    zeros1 = jnp.zeros((1, full1_dim), jnp.float32)
    ones2 = jnp.ones((1, full2_dim), jnp.float32)
    zeros2 = jnp.zeros((1, full2_dim), jnp.float32)
    return (
        # branch 1
        _kaiming_uniform(keys[0], d_in, full1_dim), _bias(keys[1], d_in, full1_dim),
        ones1, zeros1,
        _kaiming_uniform(keys[2], full1_dim, full2_dim), _bias(keys[3], full1_dim, full2_dim),
        ones2, zeros2,
        _linear_default(keys[4], full2_dim, 1), _bias(keys[5], full2_dim, 1),
        # branch 2
        _kaiming_uniform(keys[6], d_in, full1_dim), _bias(keys[7], d_in, full1_dim),
        ones1, zeros1,
        _kaiming_uniform(keys[8], full1_dim, full2_dim), _bias(keys[9], full1_dim, full2_dim),
        ones2, zeros2,
        _linear_default(keys[10], full2_dim, 1), _bias(keys[11], full2_dim, 1),
    )


def pack_params(params, state_dim, n_actions, full1_dim, full2_dim):
    """Packs the 20 raw parameters into 2 flat VMEM blobs for the kernel."""
    (w1, b1, g1, be1, w2, b2, g2, be2, wf1, bf1,
     w3, b3, g3, be3, w4, b4, g4, be4, wf2, bf2) = params
    n1 = 2 * full1_dim
    n2 = 2 * full2_dim
    cw = max(n1, n2, 2)

    # Fused first layer, split into state-rows / action-rows.
    w1c = jnp.concatenate([w1, w3], axis=1)           # (d_in, 2*F1)
    ws = w1c[:state_dim]
    wa = w1c[state_dim:]
    # Block-diagonal second layer.
    w2c = jnp.zeros((n1, n2), jnp.float32)
    w2c = w2c.at[:full1_dim, :full2_dim].set(w2)
    w2c = w2c.at[full1_dim:, full2_dim:].set(w4)
    # Block-diagonal final layer -> (2*F2, 2).
    wfc = jnp.zeros((n2, 2), jnp.float32)
    wfc = wfc.at[:full2_dim, 0:1].set(wf1)
    wfc = wfc.at[full2_dim:, 1:2].set(wf2)

    def pad_block(w, rows, cols):
        r, c = w.shape
        return jnp.pad(w, ((0, rows - r), (0, cols - c)))

    rs = _round_up(state_dim, 8)
    ra = _round_up(n_actions, 8)
    r1 = _round_up(n1, 8)
    r2 = _round_up(n2, 8)
    wblob = jnp.concatenate([
        pad_block(ws, rs, cw),
        pad_block(wa, ra, cw),
        pad_block(w2c, r1, cw),
        pad_block(wfc, r2, cw),
    ], axis=0)

    def pad_row(v, cols):
        return jnp.pad(v, ((0, 0), (0, cols - v.shape[1])))

    vblob = jnp.concatenate([
        pad_row(jnp.concatenate([b1, b3], axis=1), cw),
        pad_row(jnp.concatenate([g1, g3], axis=1), cw),
        pad_row(jnp.concatenate([be1, be3], axis=1), cw),
        pad_row(jnp.concatenate([b2, b4], axis=1), cw),
        pad_row(jnp.concatenate([g2, g4], axis=1), cw),
        pad_row(jnp.concatenate([be2, be4], axis=1), cw),
        pad_row(jnp.concatenate([bf1, bf2], axis=1), cw),
    ], axis=0)
    return wblob, vblob


# ---------------------------------------------------------------------------
# Pure-JAX reference (mirrors the PyTorch forward, uses the raw params)
# ---------------------------------------------------------------------------

def _layernorm_ref(x, gamma, beta, eps=1e-5):
    mu = jnp.mean(x, axis=-1, keepdims=True)
    xc = x - mu
    var = jnp.mean(xc * xc, axis=-1, keepdims=True)
    return xc * jax.lax.rsqrt(var + eps) * gamma + beta


def critic_reference(state, action, params, layer_norm=True):
    (w1, b1, g1, be1, w2, b2, g2, be2, wf1, bf1,
     w3, b3, g3, be3, w4, b4, g4, be4, wf2, bf2) = params
    sa = jnp.concatenate([state.astype(jnp.float32),
                          action.astype(jnp.float32)], axis=1)

    def branch(wA, bA, gA, beA, wB, bB, gB, beB, wf, bf):
        h = sa @ wA + bA
        if layer_norm:
            h = _layernorm_ref(h, gA, beA)
        h = jax.nn.relu(h)
        h = h @ wB + bB
        if layer_norm:
            h = _layernorm_ref(h, gB, beB)
        h = jax.nn.relu(h)
        return h @ wf + bf

    q1 = branch(w1, b1, g1, be1, w2, b2, g2, be2, wf1, bf1)
    q2 = branch(w3, b3, g3, be3, w4, b4, g4, be4, wf2, bf2)
    return q1, q2


# ---------------------------------------------------------------------------
# Demo / validation
# ---------------------------------------------------------------------------

if __name__ == "__main__":
    state_dim, n_actions = 12, 4
    full1_dim, full2_dim = 32, 32
    dims = (state_dim, n_actions, full1_dim, full2_dim)

    key = jax.random.PRNGKey(0)
    k_state, k_action, k_params, k_mid, k_big = jax.random.split(key, 5)

    params = make_params(k_params, state_dim, n_actions, full1_dim, full2_dim)
    wblob, vblob = pack_params(params, state_dim, n_actions, full1_dim, full2_dim)

    # 1) Small batch -> grid-less single-invocation path (+ torch-style split).
    batch = 8
    state = jax.random.normal(k_state, (batch, state_dim), jnp.float32)
    action = jax.random.normal(k_action, (batch, n_actions), jnp.float32)
    for ln in (True, False):
        q = critic_forward(state, action, wblob, vblob, dims, layer_norm=ln)
        jax.block_until_ready(q)
        q1, q2 = split_q(q)
        q1_ref, q2_ref = critic_reference(state, action, params, layer_norm=ln)
        assert q1.shape == (batch, 1) and q2.shape == (batch, 1)
        assert jnp.allclose(q1, q1_ref, atol=1e-4, rtol=1e-4)
        assert jnp.allclose(q2, q2_ref, atol=1e-4, rtol=1e-4)

    # 2) Medium batch -> pipelined grid path with >= 2 steps (v7x megacore).
    mid_batch = 256
    ks, ka = jax.random.split(k_mid)
    state_m = jax.random.normal(ks, (mid_batch, state_dim), jnp.float32)
    action_m = jax.random.normal(ka, (mid_batch, n_actions), jnp.float32)
    qm = critic_forward(state_m, action_m, wblob, vblob, dims, layer_norm=True)
    jax.block_until_ready(qm)
    q1m_ref, q2m_ref = critic_reference(state_m, action_m, params, layer_norm=True)
    ref_m = jnp.concatenate([q1m_ref, q2m_ref], axis=1)
    assert jnp.allclose(qm, ref_m, atol=1e-4, rtol=1e-4)

    # 3) Large ragged batch with bf16 inputs (halves dominant HBM read traffic;
    #    dots still accumulate in f32). Ragged last block is clipped on write.
    big_batch = 600
    ks, ka = jax.random.split(k_big)
    state_b = jax.random.normal(ks, (big_batch, state_dim),
                                jnp.float32).astype(jnp.bfloat16)
    action_b = jax.random.normal(ka, (big_batch, n_actions),
                                 jnp.float32).astype(jnp.bfloat16)
    qb = critic_forward(state_b, action_b, wblob, vblob, dims, layer_norm=True)
    jax.block_until_ready(qb)
    q1b_ref, q2b_ref = critic_reference(state_b, action_b, params, layer_norm=True)
    ref_b = jnp.concatenate([q1b_ref, q2b_ref], axis=1)
    assert qb.shape == (big_batch, 2)
    assert jnp.allclose(qb, ref_b, atol=1e-3, rtol=1e-3)

    # TODO(synk): optimizer (Adam) and checkpoint save/load are host-side and
    # intentionally not implemented as kernels.
    print("KERNEL_OK")
</pallas_src>

<mosaic_0001>
module attributes {stable_mosaic.version = 11 : i64} {
  func.func @_critic_kernel(%arg0: memref<8x12xf32, #tpu.memory_space<vmem>>, %arg1: memref<8x4xf32, #tpu.memory_space<vmem>>, %arg2: memref<152x64xf32, #tpu.memory_space<vmem>>, %arg3: memref<7x64xf32, #tpu.memory_space<vmem>>, %arg4: memref<8x2xf32, #tpu.memory_space<vmem>>) attributes {dimension_semantics = [], scalar_prefetch = 0 : i64, scratch_operands = 0 : i64, tpu.core_type = #tpu.core_type<tc>} {
    %c0 = arith.constant 0 : index
    %c0_0 = arith.constant 0 : index
    %0 = vector.load %arg2[%c0, %c0_0] : memref<152x64xf32, #tpu.memory_space<vmem>>, vector<12x64xf32>
    %c16 = arith.constant 16 : index
    %c0_1 = arith.constant 0 : index
    %1 = vector.load %arg2[%c16, %c0_1] : memref<152x64xf32, #tpu.memory_space<vmem>>, vector<4x64xf32>
    %c24 = arith.constant 24 : index
    %c0_2 = arith.constant 0 : index
    %2 = vector.load %arg2[%c24, %c0_2] : memref<152x64xf32, #tpu.memory_space<vmem>>, vector<64x64xf32>
    %c88 = arith.constant 88 : index
    %c0_3 = arith.constant 0 : index
    %3 = vector.load %arg2[%c88, %c0_3] : memref<152x64xf32, #tpu.memory_space<vmem>>, vector<64x2xf32>
    %c0_4 = arith.constant 0 : index
    %c0_5 = arith.constant 0 : index
    %4 = vector.load %arg3[%c0_4, %c0_5] : memref<7x64xf32, #tpu.memory_space<vmem>>, vector<1x64xf32>
    %c1 = arith.constant 1 : index
    %c0_6 = arith.constant 0 : index
    %5 = vector.load %arg3[%c1, %c0_6] : memref<7x64xf32, #tpu.memory_space<vmem>>, vector<1x64xf32>
    %c2 = arith.constant 2 : index
    %c0_7 = arith.constant 0 : index
    %6 = vector.load %arg3[%c2, %c0_7] : memref<7x64xf32, #tpu.memory_space<vmem>>, vector<1x64xf32>
    %c3 = arith.constant 3 : index
    %c0_8 = arith.constant 0 : index
    %7 = vector.load %arg3[%c3, %c0_8] : memref<7x64xf32, #tpu.memory_space<vmem>>, vector<1x64xf32>
    %c4 = arith.constant 4 : index
    %c0_9 = arith.constant 0 : index
    %8 = vector.load %arg3[%c4, %c0_9] : memref<7x64xf32, #tpu.memory_space<vmem>>, vector<1x64xf32>
    %c5 = arith.constant 5 : index
    %c0_10 = arith.constant 0 : index
    %9 = vector.load %arg3[%c5, %c0_10] : memref<7x64xf32, #tpu.memory_space<vmem>>, vector<1x64xf32>
    %c6 = arith.constant 6 : index
    %c0_11 = arith.constant 0 : index
    %10 = vector.load %arg3[%c6, %c0_11] : memref<7x64xf32, #tpu.memory_space<vmem>>, vector<1x2xf32>
    %11 = tpu.iota {dimensions = array<i32: 1>} : vector<1x64xi32>
    %c32_i32 = arith.constant 32 : i32
    %12 = vector.broadcast %c32_i32 : i32 to vector<1x64xi32>
    %13 = arith.cmpi slt, %11, %12 : vector<1x64xi32>
    %14 = arith.extui %13 : vector<1x64xi1> to vector<1x64xi32>
    %15 = arith.sitofp %14 : vector<1x64xi32> to vector<1x64xf32>
    %cst = arith.constant 1.000000e+00 : f32
    %16 = vector.broadcast %cst : f32 to vector<1x64xf32>
    %17 = arith.subf %16, %15 : vector<1x64xf32>
    %c0_12 = arith.constant 0 : index
    %c0_13 = arith.constant 0 : index
    %18 = vector.load %arg0[%c0_12, %c0_13] : memref<8x12xf32, #tpu.memory_space<vmem>>, vector<8x12xf32>
    %cst_14 = arith.constant dense<0.000000e+00> : vector<8x64xf32>
    %19 = tpu.matmul %18, %0, %cst_14 {dimension_numbers = #tpu.dot_dimension_numbers<[1], [0], [0], [1], [0, 0, 1, 1], [], []>} : vector<8x12xf32>, vector<12x64xf32>, vector<8x64xf32> -> vector<8x64xf32>
    %c0_15 = arith.constant 0 : index
    %c0_16 = arith.constant 0 : index
    %20 = vector.load %arg1[%c0_15, %c0_16] : memref<8x4xf32, #tpu.memory_space<vmem>>, vector<8x4xf32>
    %cst_17 = arith.constant dense<0.000000e+00> : vector<8x64xf32>
    %21 = tpu.matmul %20, %1, %cst_17 {dimension_numbers = #tpu.dot_dimension_numbers<[1], [0], [0], [1], [0, 0, 1, 1], [], []>} : vector<8x4xf32>, vector<4x64xf32>, vector<8x64xf32> -> vector<8x64xf32>
    %22 = arith.addf %19, %21 : vector<8x64xf32>
    %23 = vector.broadcast %4 : vector<1x64xf32> to vector<8x64xf32>
    %24 = arith.addf %22, %23 : vector<8x64xf32>
    %25 = vector.broadcast %15 : vector<1x64xf32> to vector<8x64xf32>
    %26 = arith.mulf %24, %25 : vector<8x64xf32>
    %cst_18 = arith.constant dense<0.000000e+00> : vector<8xf32>
    %27 = vector.multi_reduction <add>, %26, %cst_18 [1] : vector<8x64xf32> to vector<8xf32>
    %28 = vector.shape_cast %27 : vector<8xf32> to vector<8x1xf32>
    %cst_19 = arith.constant 3.125000e-02 : f32
    %29 = vector.broadcast %cst_19 : f32 to vector<8x1xf32>
    %30 = arith.mulf %28, %29 : vector<8x1xf32>
    %31 = vector.broadcast %17 : vector<1x64xf32> to vector<8x64xf32>
    %32 = arith.mulf %24, %31 : vector<8x64xf32>
    %cst_20 = arith.constant dense<0.000000e+00> : vector<8xf32>
    %33 = vector.multi_reduction <add>, %32, %cst_20 [1] : vector<8x64xf32> to vector<8xf32>
    %34 = vector.shape_cast %33 : vector<8xf32> to vector<8x1xf32>
    %cst_21 = arith.constant 3.125000e-02 : f32
    %35 = vector.broadcast %cst_21 : f32 to vector<8x1xf32>
    %36 = arith.mulf %34, %35 : vector<8x1xf32>
    %37 = arith.mulf %24, %24 : vector<8x64xf32>
    %38 = vector.broadcast %15 : vector<1x64xf32> to vector<8x64xf32>
    %39 = arith.mulf %37, %38 : vector<8x64xf32>
    %cst_22 = arith.constant dense<0.000000e+00> : vector<8xf32>
    %40 = vector.multi_reduction <add>, %39, %cst_22 [1] : vector<8x64xf32> to vector<8xf32>
    %41 = vector.shape_cast %40 : vector<8xf32> to vector<8x1xf32>
    %cst_23 = arith.constant 3.125000e-02 : f32
    %42 = vector.broadcast %cst_23 : f32 to vector<8x1xf32>
    %43 = arith.mulf %41, %42 : vector<8x1xf32>
    %44 = vector.broadcast %17 : vector<1x64xf32> to vector<8x64xf32>
    %45 = arith.mulf %37, %44 : vector<8x64xf32>
    %cst_24 = arith.constant dense<0.000000e+00> : vector<8xf32>
    %46 = vector.multi_reduction <add>, %45, %cst_24 [1] : vector<8x64xf32> to vector<8xf32>
    %47 = vector.shape_cast %46 : vector<8xf32> to vector<8x1xf32>
    %cst_25 = arith.constant 3.125000e-02 : f32
    %48 = vector.broadcast %cst_25 : f32 to vector<8x1xf32>
    %49 = arith.mulf %47, %48 : vector<8x1xf32>
    %50 = vector.broadcast %15 : vector<1x64xf32> to vector<8x64xf32>
    %51 = vector.broadcast %30 : vector<8x1xf32> to vector<8x64xf32>
    %52 = arith.mulf %50, %51 : vector<8x64xf32>
    %53 = vector.broadcast %17 : vector<1x64xf32> to vector<8x64xf32>
    %54 = vector.broadcast %36 : vector<8x1xf32> to vector<8x64xf32>
    %55 = arith.mulf %53, %54 : vector<8x64xf32>
    %56 = arith.addf %52, %55 : vector<8x64xf32>
    %57 = vector.broadcast %15 : vector<1x64xf32> to vector<8x64xf32>
    %58 = vector.broadcast %43 : vector<8x1xf32> to vector<8x64xf32>
    %59 = arith.mulf %57, %58 : vector<8x64xf32>
    %60 = vector.broadcast %17 : vector<1x64xf32> to vector<8x64xf32>
    %61 = vector.broadcast %49 : vector<8x1xf32> to vector<8x64xf32>
    %62 = arith.mulf %60, %61 : vector<8x64xf32>
    %63 = arith.addf %59, %62 : vector<8x64xf32>
    %64 = arith.mulf %56, %56 : vector<8x64xf32>
    %65 = arith.subf %63, %64 : vector<8x64xf32>
    %cst_26 = arith.constant 9.99999974E-6 : f32
    %66 = vector.broadcast %cst_26 : f32 to vector<8x64xf32>
    %67 = arith.addf %65, %66 : vector<8x64xf32>
    %68 = math.rsqrt %67 : vector<8x64xf32>
    %69 = arith.subf %24, %56 : vector<8x64xf32>
    %70 = arith.mulf %69, %68 : vector<8x64xf32>
    %71 = vector.broadcast %5 : vector<1x64xf32> to vector<8x64xf32>
    %72 = arith.mulf %70, %71 : vector<8x64xf32>
    %73 = vector.broadcast %6 : vector<1x64xf32> to vector<8x64xf32>
    %74 = arith.addf %72, %73 : vector<8x64xf32>
    %cst_27 = arith.constant 0.000000e+00 : f32
    %75 = vector.broadcast %cst_27 : f32 to vector<8x64xf32>
    %76 = arith.maximumf %74, %75 : vector<8x64xf32>
    %cst_28 = arith.constant dense<0.000000e+00> : vector<8x64xf32>
    %77 = tpu.matmul %76, %2, %cst_28 {dimension_numbers = #tpu.dot_dimension_numbers<[1], [0], [0], [1], [0, 0, 1, 1], [], []>} : vector<8x64xf32>, vector<64x64xf32>, vector<8x64xf32> -> vector<8x64xf32>
    %78 = vector.broadcast %7 : vector<1x64xf32> to vector<8x64xf32>
    %79 = arith.addf %77, %78 : vector<8x64xf32>
    %80 = vector.broadcast %15 : vector<1x64xf32> to vector<8x64xf32>
    %81 = arith.mulf %79, %80 : vector<8x64xf32>
    %cst_29 = arith.constant dense<0.000000e+00> : vector<8xf32>
    %82 = vector.multi_reduction <add>, %81, %cst_29 [1] : vector<8x64xf32> to vector<8xf32>
    %83 = vector.shape_cast %82 : vector<8xf32> to vector<8x1xf32>
    %cst_30 = arith.constant 3.125000e-02 : f32
    %84 = vector.broadcast %cst_30 : f32 to vector<8x1xf32>
    %85 = arith.mulf %83, %84 : vector<8x1xf32>
    %86 = vector.broadcast %17 : vector<1x64xf32> to vector<8x64xf32>
    %87 = arith.mulf %79, %86 : vector<8x64xf32>
    %cst_31 = arith.constant dense<0.000000e+00> : vector<8xf32>
    %88 = vector.multi_reduction <add>, %87, %cst_31 [1] : vector<8x64xf32> to vector<8xf32>
    %89 = vector.shape_cast %88 : vector<8xf32> to vector<8x1xf32>
    %cst_32 = arith.constant 3.125000e-02 : f32
    %90 = vector.broadcast %cst_32 : f32 to vector<8x1xf32>
    %91 = arith.mulf %89, %90 : vector<8x1xf32>
    %92 = arith.mulf %79, %79 : vector<8x64xf32>
    %93 = vector.broadcast %15 : vector<1x64xf32> to vector<8x64xf32>
    %94 = arith.mulf %92, %93 : vector<8x64xf32>
    %cst_33 = arith.constant dense<0.000000e+00> : vector<8xf32>
    %95 = vector.multi_reduction <add>, %94, %cst_33 [1] : vector<8x64xf32> to vector<8xf32>
    %96 = vector.shape_cast %95 : vector<8xf32> to vector<8x1xf32>
    %cst_34 = arith.constant 3.125000e-02 : f32
    %97 = vector.broadcast %cst_34 : f32 to vector<8x1xf32>
    %98 = arith.mulf %96, %97 : vector<8x1xf32>
    %99 = vector.broadcast %17 : vector<1x64xf32> to vector<8x64xf32>
    %100 = arith.mulf %92, %99 : vector<8x64xf32>
    %cst_35 = arith.constant dense<0.000000e+00> : vector<8xf32>
    %101 = vector.multi_reduction <add>, %100, %cst_35 [1] : vector<8x64xf32> to vector<8xf32>
    %102 = vector.shape_cast %101 : vector<8xf32> to vector<8x1xf32>
    %cst_36 = arith.constant 3.125000e-02 : f32
    %103 = vector.broadcast %cst_36 : f32 to vector<8x1xf32>
    %104 = arith.mulf %102, %103 : vector<8x1xf32>
    %105 = vector.broadcast %15 : vector<1x64xf32> to vector<8x64xf32>
    %106 = vector.broadcast %85 : vector<8x1xf32> to vector<8x64xf32>
    %107 = arith.mulf %105, %106 : vector<8x64xf32>
    %108 = vector.broadcast %17 : vector<1x64xf32> to vector<8x64xf32>
    %109 = vector.broadcast %91 : vector<8x1xf32> to vector<8x64xf32>
    %110 = arith.mulf %108, %109 : vector<8x64xf32>
    %111 = arith.addf %107, %110 : vector<8x64xf32>
    %112 = vector.broadcast %15 : vector<1x64xf32> to vector<8x64xf32>
    %113 = vector.broadcast %98 : vector<8x1xf32> to vector<8x64xf32>
    %114 = arith.mulf %112, %113 : vector<8x64xf32>
    %115 = vector.broadcast %17 : vector<1x64xf32> to vector<8x64xf32>
    %116 = vector.broadcast %104 : vector<8x1xf32> to vector<8x64xf32>
    %117 = arith.mulf %115, %116 : vector<8x64xf32>
    %118 = arith.addf %114, %117 : vector<8x64xf32>
    %119 = arith.mulf %111, %111 : vector<8x64xf32>
    %120 = arith.subf %118, %119 : vector<8x64xf32>
    %cst_37 = arith.constant 9.99999974E-6 : f32
    %121 = vector.broadcast %cst_37 : f32 to vector<8x64xf32>
    %122 = arith.addf %120, %121 : vector<8x64xf32>
    %123 = math.rsqrt %122 : vector<8x64xf32>
    %124 = arith.subf %79, %111 : vector<8x64xf32>
    %125 = arith.mulf %124, %123 : vector<8x64xf32>
    %126 = vector.broadcast %8 : vector<1x64xf32> to vector<8x64xf32>
    %127 = arith.mulf %125, %126 : vector<8x64xf32>
    %128 = vector.broadcast %9 : vector<1x64xf32> to vector<8x64xf32>
    %129 = arith.addf %127, %128 : vector<8x64xf32>
    %cst_38 = arith.constant 0.000000e+00 : f32
    %130 = vector.broadcast %cst_38 : f32 to vector<8x64xf32>
    %131 = arith.maximumf %129, %130 : vector<8x64xf32>
    %cst_39 = arith.constant dense<0.000000e+00> : vector<8x2xf32>
    %132 = tpu.matmul %131, %3, %cst_39 {dimension_numbers = #tpu.dot_dimension_numbers<[1], [0], [0], [1], [0, 0, 1, 1], [], []>} : vector<8x64xf32>, vector<64x2xf32>, vector<8x2xf32> -> vector<8x2xf32>
    %133 = vector.broadcast %10 : vector<1x2xf32> to vector<8x2xf32>
    %134 = arith.addf %132, %133 : vector<8x2xf32>
    %c0_40 = arith.constant 0 : index
    %c0_41 = arith.constant 0 : index
    %135 = vector.load %arg4[%c0_40, %c0_41] : memref<8x2xf32, #tpu.memory_space<vmem>>, vector<8x2xf32>
    tpu.vector_store %arg4[%c0_40, %c0_41], %134 {strides = array<i32>} : memref<8x2xf32, #tpu.memory_space<vmem>>, vector<8x2xf32>,
    return
  }
}

</mosaic_0001>

<bundles_post_ra>
// kernel: tpu_custom_call.1
= control target key start
LH: loop header
LB: loop body
LE: loop exit
PB: predicated region body
PF: predicated region fallthrough
CT: control target
= control target key end

     0   :  { %vm55_vm0 = vcmask 1043456   ;;  %vm51_vm1 = vcmask 31744   ;;  %vm79_vm2 = vcmask 97280   ;;  %v43_v5 = vlaneseq  ;;  %s427_s2 = inlined_call_operand.vmem [shape: f32[152,64], index: 2, kind: input, shape index: {}]   ;;  %s428_s1 = inlined_call_operand.vmem [shape: f32[8,4], index: 1, kind: input, shape index: {}]   ;;  %s429_s0 = inlined_call_operand.vmem [shape: f32[8,12], index: 0, kind: input, shape index: {}]   ;;  %s430_s3 = inlined_call_operand.vmem [shape: f32[7,64], index: 3, kind: input, shape index: {}]   ;;  %s431_s4 = inlined_call_operand.vmem [shape: f32[8,2], index: 4, kind: output, shape index: {}]  }
   0x1   :  { %v18_v0 = vld [vmem:[%s427_s2 + $0x8] sm:$0xf]  ;;  %v19_v1 = vld [vmem:[%s427_s2 + $0x10] sm:$0xf]  ;;  %v17_v2 = vld [vmem:[%s427_s2] sm:$0xff]  ;;  %v276_v12 = vmov 0.0  }
   0x2   :  { %260 = vmatpush.msk.msra.mxu1 %vm55_vm0, %v18_v0  ;;  %258 = vmatpush.msk.msra.mxu0 %vm55_vm0, %v19_v1  ;;  %v50_v3 = vld [vmem:[%s428_s1] sm:$0xff]  ;;  %v44_v6 = vand.u32 127, %v43_v5  ;;  %vm109_vm4 = vcmask 523264   ;;  %v27_v24 = vld [vmem:[%s427_s2 + $0x50] sm:$0xff]  ;;  %v26_v26 = vld [vmem:[%s427_s2 + $0x48] sm:$0xff]  ;;  %vm251_vm11 = vcmask 15360  }
   0x3   :  { %v49_v4 = vld [vmem:[%s429_s0] sm:$0xff]  ;;  %259 = vmatmul.msk.f32.vlgmr.msra.gmra.mxu0 %vm51_vm1, %v50_v3  ;;  %168 = vmatpush.msra.mxu2 %v27_v24  ;;  %v24_v29 = vld [vmem:[%s427_s2 + $0x38] sm:$0xff]  ;;  %v23_v30 = vld [vmem:[%s427_s2 + $0x30] sm:$0xff] }
   0x4   :  { %101 = vmatpush.msra.mxu1 %v17_v2  ;;  %v265_v8 = vld [vmem:[%s430_s3] ss:$0 sm:$0xff]  ;;  %vm45_vm3 = vcmp.lt.s32.totalorder %v44_v6, 32  ;;  %v22_v32 = vld [vmem:[%s427_s2 + $0x28] sm:$0xff]  ;;  %v20_v41 = vld [vmem:[%s427_s2 + $0x18] sm:$0xff] }
   0x5   :  { %261 = vmatmul.msk.f32.vlgmr.msra.gmra.mxu1 %vm79_vm2, %v49_v4  ;;  %v322_v13 = vsel %vm45_vm3, 1.0, %v276_v12  ;;  %169 = vmatpush.msra.mxu2 %v26_v26  ;;  %v25_v28 = vld [vmem:[%s427_s2 + $0x40] sm:$0xff]  ;;  %v30_v24 = vld [vmem:[%s427_s2 + $0x68] sm:$0xff] }
   0x6   :  { %v331_v18 = vsub.f32 1.0, %v322_v13  ;;  %v21_v36 = vld [vmem:[%s427_s2 + $0x20] sm:$0xff] }
   0x7   :  { %170 = vmatpush.msra.mxu2 %v25_v28  ;;  %v266_v56 = vld [vmem:[%s430_s3 + $0x1] ss:$0 sm:$0xff]  ;;  %v267_v59 = vld [vmem:[%s430_s3 + $0x2] ss:$0 sm:$0xff]  ;;  %v268_v63 = vld [vmem:[%s430_s3 + $0x3] ss:$0 sm:$0xff] }
   0x9   :  { %171 = vmatpush.msra.mxu2 %v24_v29 }
   0xb   :  { %172 = vmatpush.msra.mxu2 %v23_v30 }
   0xd   :  { %173 = vmatpush.msra.mxu2 %v22_v32  ;;  %v28_v32 = vld [vmem:[%s427_s2 + $0x58] sm:$0xff] }
   0xf   :  { %174 = vmatpush.msra.mxu2 %v21_v36 }
  0x11   :  { %175 = vmatpush.msra.mxu2 %v20_v41 }
  0x80   :  { %v76_v7 = vpop.f32.mrf.mxu0 }
  0x82   :  { %v103_v9 = vpop.f32.mrf.mxu1 }
  0x83   :  { %v104_v10 = vadd.f32 %v103_v9, %v76_v7 }
  0x85   :  { %v320_v11 = vadd.f32 %v265_v8, %v104_v10 }
  0x87   :  { %v108_v14 = vmul.f32 %v322_v13, %v320_v11  ;;  %v119_v15 = vmul.f32 %v320_v11, %v320_v11  ;;  %v114_v20 = vmul.f32 %v320_v11, %v331_v18 }
  0x89   :  { %v110_v16 = vsel %vm109_vm4, %v108_v14, 0.0  ;;  %v120_v17 = vmul.f32 %v322_v13, %v119_v15  ;;  %v125_v21 = vmul.f32 %v119_v15, %v331_v18  ;;  %v115_v22 = vsel %vm109_vm4, %v114_v20, 0.0  ;;  %v34_v14 = vld [vmem:[%s427_s2 + $0x88] sm:$0xff]  ;;  %v33_v15 = vld [vmem:[%s427_s2 + $0x80] sm:$0xff] }
  0x8a   :  { %111 = vadd.xlane.f32.xlu0 %v110_v16 }
  0x8b   :  { %v121_v19 = vsel %vm109_vm4, %v120_v17, 0.0  ;;  %v126_v23 = vsel %vm109_vm4, %v125_v21, 0.0 }
  0x8c   :  { %122 = vadd.xlane.f32.xlu1 %v121_v19  ;;  %v32_v19 = vld [vmem:[%s427_s2 + $0x78] sm:$0xff] }
  0x92   :  { %116 = vadd.xlane.f32.xlu0 %v115_v22 }
  0x94   :  { %127 = vadd.xlane.f32.xlu1 %v126_v23  ;;  %v31_v23 = vld [vmem:[%s427_s2 + $0x70] sm:$0xff] }
  0xfd   :  { %v112_v25 = vpop.xlane.xlu0 %111 }
  0xfe   :  { %v113_v31 = vmul.f32 0.03125, %v112_v25 }
  0xff   :  { %v123_v27 = vpop.xlane.xlu1 %122 }
 0x100   :  { %v124_v34 = vmul.f32 0.03125, %v123_v27  ;;  %v130_v38 = vmul.f32 %v322_v13, %v113_v31  ;;  %v29_v27 = vld [vmem:[%s427_s2 + $0x60] sm:$0xff] }
 0x102   :  { %v133_v42 = vmul.f32 %v322_v13, %v124_v34 }
 0x105   :  { %v117_v33 = vpop.xlane.xlu0 %116 }
 0x106   :  { %v118_v35 = vmul.f32 0.03125, %v117_v33 }
 0x107   :  { %v128_v37 = vpop.xlane.xlu1 %127 }
 0x108   :  { %v131_v39 = vmul.f32 %v118_v35, %v331_v18  ;;  %v129_v40 = vmul.f32 0.03125, %v128_v37 }
 0x10a   :  { %v132_v43 = vadd.f32 %v131_v39, %v130_v38  ;;  %v134_v44 = vmul.f32 %v129_v40, %v331_v18 }
 0x10c   :  { %v136_v45 = vmul.f32 %v132_v43, %v132_v43  ;;  %v135_v46 = vadd.f32 %v134_v44, %v133_v42  ;;  %v149_v55 = vsub.f32 %v320_v11, %v132_v43  ;;  %v35_v11 = vld [vmem:[%s427_s2 + $0x90] sm:$0xff]  ;;  %v269_v43 = vld [vmem:[%s430_s3 + $0x4] ss:$0 sm:$0xff] }
 0x10d   :  { %239 = vmatpush.msra.mxu3 %v35_v11 }
 0x10e   :  { %v137_v47 = vsub.f32 %v135_v46, %v136_v45  ;;  %v270_v46 = vld [vmem:[%s430_s3 + $0x5] ss:$0 sm:$0xff] }
 0x10f   :  { %240 = vmatpush.msra.mxu3 %v34_v14 }
 0x110   :  { %v138_v48 = vadd.f32 1e-05, %v137_v47 }
 0x111   :  { %241 = vmatpush.msra.mxu3 %v33_v15 }
 0x112   :  { %272 = vrsqrt.f32 %v138_v48  ;;  %vm145_vm6 = vweird.f32 %v138_v48 }
 0x113   :  { %242 = vmatpush.msra.mxu3 %v32_v19 }
 0x115   :  { %243 = vmatpush.msra.mxu3 %v31_v23 }
 0x117   :  { %244 = vmatpush.msra.mxu3 %v30_v24 }
 0x118   :  { %v273_v49 = vpop.eup %272 }
 0x119   :  { %v140_v50 = vmul.f32 %v273_v49, %v138_v48  ;;  %vm146_vm5 = vweird.f32 %v273_v49  ;;  %245 = vmatpush.msra.mxu3 %v29_v27 }
 0x11a   :  { %vm147_vm7 = vmor %vm145_vm6, %vm146_vm5 }
 0x11b   :  { %v141_v51 = vmul.f32 %v273_v49, %v140_v50  ;;  %246 = vmatpush.msra.mxu3 %v28_v32  ;;  %v271_v50 = vld [vmem:[%s430_s3 + $0x6] ss:$0 sm:$0xff] }
 0x11d   :  { %v142_v52 = vmul.f32 0.5, %v141_v51 }
 0x11f   :  { %v143_v53 = vsub.f32 1.5, %v142_v52 }
 0x121   :  { %v144_v54 = vmul.f32 %v273_v49, %v143_v53 }
 0x123   :  { %v148_v57 = vsel %vm147_vm7, %v273_v49, %v144_v54 }
 0x124   :  { %v150_v58 = vmul.f32 %v149_v55, %v148_v57 }
 0x126   :  { %v152_v60 = vmul.f32 %v266_v56, %v150_v58 }
 0x128   :  { %v154_v61 = vadd.f32 %v267_v59, %v152_v60 }
 0x12a   :  { %v155_v62 = vmax.f32 %v154_v61, 0.0 }
 0x12c   :  { %262 = vmatmul.msk.f32.vlgmr.msra.gmra.mxu2 %vm109_vm4, %v155_v62 }
 0x1af   :  { %v177_v0 = vpop.f32.mrf.mxu2 }
 0x1b0   :  { %v178_v1 = vadd.f32 %v268_v63, %v177_v0 }
 0x1b2   :  { %v180_v2 = vmul.f32 %v322_v13, %v178_v1  ;;  %v190_v3 = vmul.f32 %v178_v1, %v178_v1  ;;  %v185_v9 = vmul.f32 %v178_v1, %v331_v18 }
 0x1b4   :  { %v181_v4 = vsel %vm109_vm4, %v180_v2, 0.0  ;;  %v196_v5 = vmul.f32 %v190_v3, %v331_v18  ;;  %v191_v6 = vmul.f32 %v322_v13, %v190_v3  ;;  %v186_v10 = vsel %vm109_vm4, %v185_v9, 0.0 }
 0x1b5   :  { %182 = vadd.xlane.f32.xlu2 %v181_v4 }
 0x1b6   :  { %v197_v7 = vsel %vm109_vm4, %v196_v5, 0.0  ;;  %v192_v8 = vsel %vm109_vm4, %v191_v6, 0.0 }
 0x1b7   :  { %198 = vadd.xlane.f32.xlu1 %v197_v7  ;;  %193 = vadd.xlane.f32.xlu0 %v192_v8 }
 0x1bd   :  { %187 = vadd.xlane.f32.xlu2 %v186_v10 }
 0x228   :  { %v183_v12 = vpop.xlane.xlu2 %182 }
 0x229   :  { %v184_v20 = vmul.f32 0.03125, %v183_v12 }
 0x22a   :  { %v199_v16 = vpop.xlane.xlu1 %198  ;;  %v194_v17 = vpop.xlane.xlu0 %193 }
 0x22b   :  { %v200_v21 = vmul.f32 0.03125, %v199_v16  ;;  %v195_v22 = vmul.f32 0.03125, %v194_v17  ;;  %v201_v28 = vmul.f32 %v322_v13, %v184_v20 }
 0x22d   :  { %v205_v29 = vmul.f32 %v200_v21, %v331_v18  ;;  %v204_v30 = vmul.f32 %v322_v13, %v195_v22 }
 0x22f   :  { %v206_v34 = vadd.f32 %v205_v29, %v204_v30 }
 0x230   :  { %v188_v25 = vpop.xlane.xlu2 %187 }
 0x231   :  { %v189_v26 = vmul.f32 0.03125, %v188_v25 }
 0x233   :  { %v202_v31 = vmul.f32 %v189_v26, %v331_v18 }
 0x235   :  { %v203_v33 = vadd.f32 %v202_v31, %v201_v28 }
 0x237   :  { %v207_v35 = vmul.f32 %v203_v33, %v203_v33  ;;  %v220_v18 = vsub.f32 %v178_v1, %v203_v33 }
 0x239   :  { %v208_v36 = vsub.f32 %v206_v34, %v207_v35 }
 0x23b   :  { %v209_v37 = vadd.f32 1e-05, %v208_v36 }
 0x23d   :  { %274 = vrsqrt.f32 %v209_v37  ;;  %vm216_vm9 = vweird.f32 %v209_v37 }
 0x243   :  { %v275_v38 = vpop.eup %274 }
 0x244   :  { %v211_v39 = vmul.f32 %v275_v38, %v209_v37  ;;  %vm217_vm8 = vweird.f32 %v275_v38 }
 0x245   :  { %vm218_vm10 = vmor %vm216_vm9, %vm217_vm8 }
 0x246   :  { %v212_v40 = vmul.f32 %v275_v38, %v211_v39 }
 0x248   :  { %v213_v41 = vmul.f32 0.5, %v212_v40 }
 0x24a   :  { %v214_v42 = vsub.f32 1.5, %v213_v41 }
 0x24c   :  { %v215_v13 = vmul.f32 %v275_v38, %v214_v42 }
 0x24e   :  { %v219_v44 = vsel %vm218_vm10, %v275_v38, %v215_v13 }
 0x24f   :  { %v221_v45 = vmul.f32 %v220_v18, %v219_v44 }
 0x251   :  { %v223_v47 = vmul.f32 %v269_v43, %v221_v45 }
 0x253   :  { %v225_v48 = vadd.f32 %v270_v46, %v223_v47 }
 0x255   :  { %v226_v49 = vmax.f32 %v225_v48, 0.0 }
 0x257   :  { %263 = vmatmul.msk.f32.vlgmr.msra.gmra.mxu3 %vm109_vm4, %v226_v49 }
 0x2da   :  { %v248_v51 = vpop.f32.mrf.mxu3 }
 0x2db   :  { %v249_v52 = vadd.f32 %v271_v50, %v248_v51 }
 0x2dd   :  { %252 = vst.msk [vmem:[%s431_s4] sm:$0xff] %vm251_vm11, %v249_v52 }

</bundles_post_ra>
